<compile_context>
chip_gen: v7x
topology: tpu7x:2x2x1
jax: 0.10.0
libtpu: 0.0.40
codegen_flags: <defaults>
</compile_context>

<pallas_src>
import math
from functools import partial

import jax
import jax.numpy as jnp
from jax.experimental import pallas as pl
from jax.experimental.pallas import tpu as pltpu


# ----------------------- in-kernel helpers (f32 VPU math) -----------------------

def _layernorm(x, w, b, eps=1e-6):
    # Matches nn.LayerNorm(embed_dim, eps=1e-6): biased variance over last dim.
    mean = jnp.mean(x, axis=-1, keepdims=True)
    xc = x - mean
    var = jnp.mean(xc * xc, axis=-1, keepdims=True)
    return xc * jax.lax.rsqrt(var + eps) * w + b


def _gelu_exact(x):
    # F.gelu default = exact (erf-based) GELU; kept exact to preserve semantics.
    return 0.5 * x * (1.0 + jax.lax.erf(x * (1.0 / math.sqrt(2.0))))


def _softmax_last(s):
    m = jnp.max(s, axis=-1, keepdims=True)
    e = jnp.exp(s - m)
    inv = pl.reciprocal(jnp.sum(e, axis=-1, keepdims=True), approx=True)  # EUP
    return e * inv


# ----------------------- Pallas kernel -----------------------

def transformer_encoder_kernel(num_heads, d_h, mlp_chunk,
                               z_ref, ln1w_ref, ln1b_ref,
                               wqkv_ref, bqkv_ref, wproj_ref, bproj_ref,
                               ln2w_ref, ln2b_ref,
                               wfc1_ref, bfc1_ref, wfc2_ref, bfc2_ref,
                               out_ref):
    f32 = jnp.float32
    bf16 = jnp.bfloat16
    H = num_heads
    D = H * d_h
    N = z_ref.shape[0]

    z = z_ref[...]                                    # (N, D) f32

    # ---------- block 1: LayerNorm -> MHA -> residual ----------
    h1 = _layernorm(z, ln1w_ref[...], ln1b_ref[...])
    qkv = jnp.dot(h1.astype(bf16), wqkv_ref[...],
                  preferred_element_type=f32) + bqkv_ref[...]   # (N, 3D)
    # qkv columns are [q(all heads) | k(all heads) | v(all heads)], head-major,
    # d_h contiguous per head (matches reshape/permute in the PyTorch module).
    # 1/sqrt(d_h) is already folded into the q columns (wrapper).

    def to_heads(x2d):
        # (N, D) -> (H, N, d_h): one lane-splitting reshape + one lane-aware
        # leading-axes transpose, instead of H masked column slices.
        return pltpu.einshape("nhd->hnd", x2d.reshape(N, H, d_h))

    q3 = to_heads(qkv[:, 0 * D:1 * D]).astype(bf16)   # (H, N, d_h)
    k3 = to_heads(qkv[:, 1 * D:2 * D]).astype(bf16)
    v3 = to_heads(qkv[:, 2 * D:3 * D]).astype(bf16)

    # One head-batched QK^T and one head-batched PV (no per-head loop, no
    # per-head masked stores).
    s = jnp.einsum("hnd,hmd->hnm", q3, k3,
                   preferred_element_type=f32)        # (H, N, N)
    p = _softmax_last(s)
    o3 = jnp.einsum("hnm,hmd->hnd", p.astype(bf16), v3,
                    preferred_element_type=f32)       # (H, N, d_h)
    o = pltpu.einshape("hnd->nhd", o3).reshape(N, D)  # lane-dense (N, D)

    mha = jnp.dot(o.astype(bf16), wproj_ref[...],
                  preferred_element_type=f32) + bproj_ref[...]
    z1 = mha + z

    # ---------- block 2: LayerNorm -> MLP (GELU) -> residual ----------
    h2 = _layernorm(z1, ln2w_ref[...], ln2b_ref[...]).astype(bf16)
    D_in = wfc1_ref.shape[1]

    if mlp_chunk >= D_in:
        # Default path: full-K fc1/fc2, no accumulator traffic.
        f1 = jnp.dot(h2, wfc1_ref[...],
                     preferred_element_type=f32) + bfc1_ref[...]
        f1 = _gelu_exact(f1).astype(bf16)
        mlp = jnp.dot(f1, wfc2_ref[...], preferred_element_type=f32)
    else:
        # Chunked fallback for very large N*D_in (value accumulation only).
        mlp = jnp.zeros((N, D), f32)
        for c0 in range(0, D_in, mlp_chunk):
            c1 = min(c0 + mlp_chunk, D_in)
            f1 = jnp.dot(h2, wfc1_ref[:, c0:c1],
                         preferred_element_type=f32) + bfc1_ref[:, c0:c1]
            f1 = _gelu_exact(f1).astype(bf16)
            mlp = mlp + jnp.dot(f1, wfc2_ref[c0:c1, :],
                                preferred_element_type=f32)

    out_ref[...] = (mlp + bfc2_ref[...] + z1).astype(out_ref.dtype)


# ----------------------- wrapper -----------------------

def transformer_encoder(z, params, *, num_heads, mlp_chunk=None):
    B, N, D = z.shape
    d_h = D // num_heads
    D_in = params["wfc1"].shape[1]

    f32, bf16 = jnp.float32, jnp.bfloat16

    # No MLP chunking unless the f32 f1 intermediate gets large (review: the
    # repeated (N, D) accumulator RMW passes cost more than the saved VMEM).
    if mlp_chunk is None:
        mlp_chunk = D_in if N * D_in * 4 <= 12 * 2**20 else 2048
    mlp_chunk = min(mlp_chunk, D_in)

    # Fold the attention scale into the q-columns of the qkv projection.
    # (One-time parameter transform at load time in a real deployment.)
    scale = d_h ** (-0.5)
    wqkv = params["wqkv"].astype(f32).at[:, :D].multiply(scale)
    bqkv = params["bqkv"].astype(f32).at[:, :D].multiply(scale)

    # MXU operands in bf16 (halves weight DMA bytes + weight VMEM footprint);
    # biases / LayerNorm params stay f32 (added post f32 accumulation).
    wqkv = wqkv.astype(bf16)
    wproj = params["wproj"].astype(bf16)
    wfc1 = params["wfc1"].astype(bf16)
    wfc2 = params["wfc2"].astype(bf16)

    # Explicit VMEM budget with headroom, capped at 48 MiB (v7x: 64 MiB/TC
    # physical minus compiler internal scratch / I/O staging).
    w_bytes = 2 * (D * 3 * D + D * D + D * D_in + D_in * D)
    b_bytes = 4 * (3 * D + D + D_in + D + 4 * D)
    io_bytes = 2 * 2 * N * D * 4                       # z + out, double-buffered
    act_bytes = 4 * (10 * N * D + 2 * num_heads * N * N
                     + 3 * N * D + 2 * N * mlp_chunk)
    est = w_bytes + b_bytes + io_bytes + act_bytes
    vmem_limit = int(min(max(2 * est, 16 * 2**20), 48 * 2**20))

    # Weights/biases: whole array resident in VMEM, single buffer (no
    # per-grid-step pipelining / double buffering of constant blocks).
    def resident():
        return pl.BlockSpec(memory_space=pltpu.MemorySpace.VMEM)

    weight_specs = [resident() for _ in range(12)]

    kernel = partial(transformer_encoder_kernel, num_heads, d_h, mlp_chunk)

    return pl.pallas_call(
        kernel,
        out_shape=jax.ShapeDtypeStruct((B, N, D), f32),
        grid_spec=pltpu.PrefetchScalarGridSpec(
            num_scalar_prefetch=0,
            grid=(B,),
            in_specs=[pl.BlockSpec((None, N, D), lambda b: (b, 0, 0))]
                     + weight_specs,
            out_specs=pl.BlockSpec((None, N, D), lambda b: (b, 0, 0)),
        ),
        compiler_params=pltpu.CompilerParams(
            dimension_semantics=("parallel",),
            vmem_limit_bytes=vmem_limit,
        ),
    )(z,
      params["ln1_w"], params["ln1_b"],
      wqkv, bqkv, wproj, params["bproj"],
      params["ln2_w"], params["ln2_b"],
      wfc1, params["bfc1"], wfc2, params["bfc2"])


# ----------------------- plain-JAX f32 reference (verification) -----------------------

def reference_encoder(z, params, *, num_heads):
    B, N, D = z.shape
    d_h = D // num_heads

    def ln(x, w, b):
        mean = jnp.mean(x, axis=-1, keepdims=True)
        var = jnp.mean((x - mean) ** 2, axis=-1, keepdims=True)
        return (x - mean) / jnp.sqrt(var + 1e-6) * w + b

    h = ln(z, params["ln1_w"], params["ln1_b"])
    qkv = h @ params["wqkv"] + params["bqkv"]                 # (B, N, 3D)
    qkv = qkv.reshape(B, N, 3, num_heads, d_h).transpose(2, 0, 3, 1, 4)
    q, k, v = qkv[0], qkv[1], qkv[2]                          # (B, H, N, d_h)
    s = jnp.einsum("bhnd,bhmd->bhnm", q, k) * (d_h ** -0.5)
    p = jax.nn.softmax(s, axis=-1)
    o = jnp.einsum("bhnm,bhmd->bhnd", p, v)
    o = o.transpose(0, 2, 1, 3).reshape(B, N, D)
    z1 = o @ params["wproj"] + params["bproj"] + z

    h2 = ln(z1, params["ln2_w"], params["ln2_b"])
    f1 = jax.nn.gelu(h2 @ params["wfc1"] + params["bfc1"], approximate=False)
    f2 = f1 @ params["wfc2"] + params["bfc2"]
    return f2 + z1


# ----------------------- main -----------------------

if __name__ == "__main__":
    B, N, D = 2, 8, 64            # batch, seq, embed_dim (small test shapes)
    num_heads, mlp_ratio = 4, 4
    D_in = D * mlp_ratio          # 256

    key = jax.random.PRNGKey(0)
    keys = jax.random.split(key, 8)

    def lin(k, fan_in, fan_out):
        bound = 1.0 / math.sqrt(fan_in)
        kw, kb = jax.random.split(k)
        w = jax.random.uniform(kw, (fan_in, fan_out), jnp.float32, -bound, bound)
        b = jax.random.uniform(kb, (1, fan_out), jnp.float32, -bound, bound)
        return w, b

    wqkv, bqkv = lin(keys[0], D, 3 * D)
    wproj, bproj = lin(keys[1], D, D)
    wfc1, bfc1 = lin(keys[2], D, D_in)
    wfc2, bfc2 = lin(keys[3], D_in, D)

    params = dict(
        ln1_w=jnp.ones((1, D), jnp.float32), ln1_b=jnp.zeros((1, D), jnp.float32),
        ln2_w=jnp.ones((1, D), jnp.float32), ln2_b=jnp.zeros((1, D), jnp.float32),
        wqkv=wqkv, bqkv=bqkv, wproj=wproj, bproj=bproj,
        wfc1=wfc1, bfc1=bfc1, wfc2=wfc2, bfc2=bfc2,
    )

    z = jax.random.normal(keys[4], (B, N, D), jnp.float32)

    ref = reference_encoder(z, params, num_heads=num_heads)

    # Default path: un-chunked MLP, batched-heads attention.
    out = transformer_encoder(z, params, num_heads=num_heads)
    out = jax.block_until_ready(out)
    assert out.shape == (B, N, D)
    # Looser tolerance than pure-f32: matmul operands are bf16 (f32 accumulate).
    assert jnp.allclose(out, ref, atol=2e-2, rtol=2e-2), "mismatch vs reference"

    # Chunked-MLP fallback path (exercised for coverage at tiny shapes).
    out_c = transformer_encoder(z, params, num_heads=num_heads, mlp_chunk=128)
    out_c = jax.block_until_ready(out_c)
    assert jnp.allclose(out_c, ref, atol=2e-2, rtol=2e-2), "chunked mismatch"

    print("KERNEL_OK")
</pallas_src>

<mosaic_0001>
module attributes {stable_mosaic.version = 11 : i64} {
  func.func @transformer_encoder_kernel(%arg0: i32, %arg1: memref<1x8x64xf32, #tpu.memory_space<vmem>>, %arg2: memref<1x64xf32, #tpu.memory_space<vmem>>, %arg3: memref<1x64xf32, #tpu.memory_space<vmem>>, %arg4: memref<64x192xbf16, #tpu.memory_space<vmem>>, %arg5: memref<1x192xf32, #tpu.memory_space<vmem>>, %arg6: memref<64x64xbf16, #tpu.memory_space<vmem>>, %arg7: memref<1x64xf32, #tpu.memory_space<vmem>>, %arg8: memref<1x64xf32, #tpu.memory_space<vmem>>, %arg9: memref<1x64xf32, #tpu.memory_space<vmem>>, %arg10: memref<64x256xbf16, #tpu.memory_space<vmem>>, %arg11: memref<1x256xf32, #tpu.memory_space<vmem>>, %arg12: memref<256x64xbf16, #tpu.memory_space<vmem>>, %arg13: memref<1x64xf32, #tpu.memory_space<vmem>>, %arg14: memref<1x8x64xf32, #tpu.memory_space<vmem>>) attributes {dimension_semantics = [#tpu.dimension_semantics<parallel>], iteration_bounds = array<i64: 2>, scalar_prefetch = 0 : i64, scratch_operands = 0 : i64, tpu.core_type = #tpu.core_type<tc>, window_params = [{transform_indices = @transform_0, window_bounds = array<i64: 1, 8, 64>}, {pipeline_mode = #tpu.pipeline_mode<synchronous>, transform_indices = @transform_1, window_bounds = array<i64: 1, 64>}, {pipeline_mode = #tpu.pipeline_mode<synchronous>, transform_indices = @transform_2, window_bounds = array<i64: 1, 64>}, {pipeline_mode = #tpu.pipeline_mode<synchronous>, transform_indices = @transform_3, window_bounds = array<i64: 64, 192>}, {pipeline_mode = #tpu.pipeline_mode<synchronous>, transform_indices = @transform_4, window_bounds = array<i64: 1, 192>}, {pipeline_mode = #tpu.pipeline_mode<synchronous>, transform_indices = @transform_5, window_bounds = array<i64: 64, 64>}, {pipeline_mode = #tpu.pipeline_mode<synchronous>, transform_indices = @transform_6, window_bounds = array<i64: 1, 64>}, {pipeline_mode = #tpu.pipeline_mode<synchronous>, transform_indices = @transform_7, window_bounds = array<i64: 1, 64>}, {pipeline_mode = #tpu.pipeline_mode<synchronous>, transform_indices = @transform_8, window_bounds = array<i64: 1, 64>}, {pipeline_mode = #tpu.pipeline_mode<synchronous>, transform_indices = @transform_9, window_bounds = array<i64: 64, 256>}, {pipeline_mode = #tpu.pipeline_mode<synchronous>, transform_indices = @transform_10, window_bounds = array<i64: 1, 256>}, {pipeline_mode = #tpu.pipeline_mode<synchronous>, transform_indices = @transform_11, window_bounds = array<i64: 256, 64>}, {pipeline_mode = #tpu.pipeline_mode<synchronous>, transform_indices = @transform_12, window_bounds = array<i64: 1, 64>}, {transform_indices = @transform_13, window_bounds = array<i64: 1, 8, 64>}]} {
    %c0 = arith.constant 0 : index
    %c0_0 = arith.constant 0 : index
    %c0_1 = arith.constant 0 : index
    %0 = vector.load %arg1[%c0, %c0_0, %c0_1] : memref<1x8x64xf32, #tpu.memory_space<vmem>>, vector<1x8x64xf32>
    %1 = vector.shape_cast %0 : vector<1x8x64xf32> to vector<8x64xf32>
    %c0_2 = arith.constant 0 : index
    %c0_3 = arith.constant 0 : index
    %2 = vector.load %arg2[%c0_2, %c0_3] : memref<1x64xf32, #tpu.memory_space<vmem>>, vector<1x64xf32>
    %c0_4 = arith.constant 0 : index
    %c0_5 = arith.constant 0 : index
    %3 = vector.load %arg3[%c0_4, %c0_5] : memref<1x64xf32, #tpu.memory_space<vmem>>, vector<1x64xf32>
    %cst = arith.constant dense<0.000000e+00> : vector<8xf32>
    %4 = vector.multi_reduction <add>, %1, %cst [1] : vector<8x64xf32> to vector<8xf32>
    %5 = vector.shape_cast %4 : vector<8xf32> to vector<8x1xf32>
    %cst_6 = arith.constant 6.400000e+01 : f32
    %6 = vector.broadcast %cst_6 : f32 to vector<8x1xf32>
    %7 = arith.divf %5, %6 : vector<8x1xf32>
    %8 = vector.broadcast %7 : vector<8x1xf32> to vector<8x64xf32>
    %9 = arith.subf %1, %8 : vector<8x64xf32>
    %10 = arith.mulf %9, %9 : vector<8x64xf32>
    %cst_7 = arith.constant dense<0.000000e+00> : vector<8xf32>
    %11 = vector.multi_reduction <add>, %10, %cst_7 [1] : vector<8x64xf32> to vector<8xf32>
    %12 = vector.shape_cast %11 : vector<8xf32> to vector<8x1xf32>
    %cst_8 = arith.constant 6.400000e+01 : f32
    %13 = vector.broadcast %cst_8 : f32 to vector<8x1xf32>
    %14 = arith.divf %12, %13 : vector<8x1xf32>
    %cst_9 = arith.constant 9.99999997E-7 : f32
    %15 = vector.broadcast %cst_9 : f32 to vector<8x1xf32>
    %16 = arith.addf %14, %15 : vector<8x1xf32>
    %17 = math.rsqrt %16 : vector<8x1xf32>
    %18 = vector.broadcast %17 : vector<8x1xf32> to vector<8x64xf32>
    %19 = arith.mulf %9, %18 : vector<8x64xf32>
    %20 = vector.broadcast %2 : vector<1x64xf32> to vector<8x64xf32>
    %21 = arith.mulf %19, %20 : vector<8x64xf32>
    %22 = vector.broadcast %3 : vector<1x64xf32> to vector<8x64xf32>
    %23 = arith.addf %21, %22 : vector<8x64xf32>
    %24 = arith.truncf %23 : vector<8x64xf32> to vector<8x64xbf16>
    %c0_10 = arith.constant 0 : index
    %c0_11 = arith.constant 0 : index
    %25 = vector.load %arg4[%c0_10, %c0_11] : memref<64x192xbf16, #tpu.memory_space<vmem>>, vector<64x192xbf16>
    %cst_12 = arith.constant dense<0.000000e+00> : vector<8x192xf32>
    %26 = tpu.matmul %24, %25, %cst_12 {dimension_numbers = #tpu.dot_dimension_numbers<[1], [0], [0], [1], [0, 0, 1, 1], [], []>} : vector<8x64xbf16>, vector<64x192xbf16>, vector<8x192xf32> -> vector<8x192xf32>
    %c0_13 = arith.constant 0 : index
    %c0_14 = arith.constant 0 : index
    %27 = vector.load %arg5[%c0_13, %c0_14] : memref<1x192xf32, #tpu.memory_space<vmem>>, vector<1x192xf32>
    %28 = vector.broadcast %27 : vector<1x192xf32> to vector<8x192xf32>
    %29 = arith.addf %26, %28 : vector<8x192xf32>
    %30 = vector.extract_strided_slice %29 {offsets = [0, 0], sizes = [8, 64], strides = [1, 1]} : vector<8x192xf32> to vector<8x64xf32>
    %31 = vector.shape_cast %30 : vector<8x64xf32> to vector<8x4x16xf32>
    %32 = tpu.transpose %31, [1, 0, 2] : vector<8x4x16xf32> -> vector<4x8x16xf32>
    %33 = arith.truncf %32 : vector<4x8x16xf32> to vector<4x8x16xbf16>
    %34 = vector.extract_strided_slice %29 {offsets = [0, 64], sizes = [8, 64], strides = [1, 1]} : vector<8x192xf32> to vector<8x64xf32>
    %35 = vector.shape_cast %34 : vector<8x64xf32> to vector<8x4x16xf32>
    %36 = tpu.transpose %35, [1, 0, 2] : vector<8x4x16xf32> -> vector<4x8x16xf32>
    %37 = arith.truncf %36 : vector<4x8x16xf32> to vector<4x8x16xbf16>
    %38 = vector.extract_strided_slice %29 {offsets = [0, 128], sizes = [8, 64], strides = [1, 1]} : vector<8x192xf32> to vector<8x64xf32>
    %39 = vector.shape_cast %38 : vector<8x64xf32> to vector<8x4x16xf32>
    %40 = tpu.transpose %39, [1, 0, 2] : vector<8x4x16xf32> -> vector<4x8x16xf32>
    %41 = arith.truncf %40 : vector<4x8x16xf32> to vector<4x8x16xbf16>
    "tpu.trace_start"() <{level = 10 : i32, message = "hnd,hmd->hnm"}> : () -> ()
    %cst_15 = arith.constant dense<0.000000e+00> : vector<4x8x8xf32>
    %42 = tpu.matmul %33, %37, %cst_15 {dimension_numbers = #tpu.dot_dimension_numbers<[2], [2], [1], [1], [0, 0, 0, 1, 1, 1], [0], [0]>} : vector<4x8x16xbf16>, vector<4x8x16xbf16>, vector<4x8x8xf32> -> vector<4x8x8xf32>
    "tpu.trace_stop"() : () -> ()
    %cst_16 = arith.constant dense<0xFF800000> : vector<4x8xf32>
    %43 = vector.multi_reduction <maximumf>, %42, %cst_16 [2] : vector<4x8x8xf32> to vector<4x8xf32>
    %44 = vector.shape_cast %43 : vector<4x8xf32> to vector<4x8x1xf32>
    %45 = vector.broadcast %44 : vector<4x8x1xf32> to vector<4x8x8xf32>
    %46 = arith.subf %42, %45 : vector<4x8x8xf32>
    %47 = math.exp %46 : vector<4x8x8xf32>
    %cst_17 = arith.constant dense<0.000000e+00> : vector<4x8xf32>
    %48 = vector.multi_reduction <add>, %47, %cst_17 [2] : vector<4x8x8xf32> to vector<4x8xf32>
    %49 = vector.shape_cast %48 : vector<4x8xf32> to vector<4x8x1xf32>
    %50 = tpu.reciprocal %49 {approx = true} : vector<4x8x1xf32> -> vector<4x8x1xf32>
    %51 = vector.broadcast %50 : vector<4x8x1xf32> to vector<4x8x8xf32>
    %52 = arith.mulf %47, %51 : vector<4x8x8xf32>
    %53 = arith.truncf %52 : vector<4x8x8xf32> to vector<4x8x8xbf16>
    "tpu.trace_start"() <{level = 10 : i32, message = "hnm,hmd->hnd"}> : () -> ()
    %cst_18 = arith.constant dense<0.000000e+00> : vector<4x8x16xf32>
    %54 = tpu.matmul %53, %41, %cst_18 {dimension_numbers = #tpu.dot_dimension_numbers<[2], [1], [1], [2], [0, 0, 0, 1, 1, 2], [0], [0]>} : vector<4x8x8xbf16>, vector<4x8x16xbf16>, vector<4x8x16xf32> -> vector<4x8x16xf32>
    "tpu.trace_stop"() : () -> ()
    %55 = tpu.transpose %54, [1, 0, 2] : vector<4x8x16xf32> -> vector<8x4x16xf32>
    %56 = vector.shape_cast %55 : vector<8x4x16xf32> to vector<8x64xf32>
    %57 = arith.truncf %56 : vector<8x64xf32> to vector<8x64xbf16>
    %c0_19 = arith.constant 0 : index
    %c0_20 = arith.constant 0 : index
    %58 = vector.load %arg6[%c0_19, %c0_20] : memref<64x64xbf16, #tpu.memory_space<vmem>>, vector<64x64xbf16>
    %cst_21 = arith.constant dense<0.000000e+00> : vector<8x64xf32>
    %59 = tpu.matmul %57, %58, %cst_21 {dimension_numbers = #tpu.dot_dimension_numbers<[1], [0], [0], [1], [0, 0, 1, 1], [], []>} : vector<8x64xbf16>, vector<64x64xbf16>, vector<8x64xf32> -> vector<8x64xf32>
    %c0_22 = arith.constant 0 : index
    %c0_23 = arith.constant 0 : index
    %60 = vector.load %arg7[%c0_22, %c0_23] : memref<1x64xf32, #tpu.memory_space<vmem>>, vector<1x64xf32>
    %61 = vector.broadcast %60 : vector<1x64xf32> to vector<8x64xf32>
    %62 = arith.addf %59, %61 : vector<8x64xf32>
    %63 = arith.addf %62, %1 : vector<8x64xf32>
    %c0_24 = arith.constant 0 : index
    %c0_25 = arith.constant 0 : index
    %64 = vector.load %arg8[%c0_24, %c0_25] : memref<1x64xf32, #tpu.memory_space<vmem>>, vector<1x64xf32>
    %c0_26 = arith.constant 0 : index
    %c0_27 = arith.constant 0 : index
    %65 = vector.load %arg9[%c0_26, %c0_27] : memref<1x64xf32, #tpu.memory_space<vmem>>, vector<1x64xf32>
    %cst_28 = arith.constant dense<0.000000e+00> : vector<8xf32>
    %66 = vector.multi_reduction <add>, %63, %cst_28 [1] : vector<8x64xf32> to vector<8xf32>
    %67 = vector.shape_cast %66 : vector<8xf32> to vector<8x1xf32>
    %cst_29 = arith.constant 6.400000e+01 : f32
    %68 = vector.broadcast %cst_29 : f32 to vector<8x1xf32>
    %69 = arith.divf %67, %68 : vector<8x1xf32>
    %70 = vector.broadcast %69 : vector<8x1xf32> to vector<8x64xf32>
    %71 = arith.subf %63, %70 : vector<8x64xf32>
    %72 = arith.mulf %71, %71 : vector<8x64xf32>
    %cst_30 = arith.constant dense<0.000000e+00> : vector<8xf32>
    %73 = vector.multi_reduction <add>, %72, %cst_30 [1] : vector<8x64xf32> to vector<8xf32>
    %74 = vector.shape_cast %73 : vector<8xf32> to vector<8x1xf32>
    %cst_31 = arith.constant 6.400000e+01 : f32
    %75 = vector.broadcast %cst_31 : f32 to vector<8x1xf32>
    %76 = arith.divf %74, %75 : vector<8x1xf32>
    %cst_32 = arith.constant 9.99999997E-7 : f32
    %77 = vector.broadcast %cst_32 : f32 to vector<8x1xf32>
    %78 = arith.addf %76, %77 : vector<8x1xf32>
    %79 = math.rsqrt %78 : vector<8x1xf32>
    %80 = vector.broadcast %79 : vector<8x1xf32> to vector<8x64xf32>
    %81 = arith.mulf %71, %80 : vector<8x64xf32>
    %82 = vector.broadcast %64 : vector<1x64xf32> to vector<8x64xf32>
    %83 = arith.mulf %81, %82 : vector<8x64xf32>
    %84 = vector.broadcast %65 : vector<1x64xf32> to vector<8x64xf32>
    %85 = arith.addf %83, %84 : vector<8x64xf32>
    %86 = arith.truncf %85 : vector<8x64xf32> to vector<8x64xbf16>
    %c0_33 = arith.constant 0 : index
    %c0_34 = arith.constant 0 : index
    %87 = vector.load %arg10[%c0_33, %c0_34] : memref<64x256xbf16, #tpu.memory_space<vmem>>, vector<64x256xbf16>
    %cst_35 = arith.constant dense<0.000000e+00> : vector<8x256xf32>
    %88 = tpu.matmul %86, %87, %cst_35 {dimension_numbers = #tpu.dot_dimension_numbers<[1], [0], [0], [1], [0, 0, 1, 1], [], []>} : vector<8x64xbf16>, vector<64x256xbf16>, vector<8x256xf32> -> vector<8x256xf32>
    %c0_36 = arith.constant 0 : index
    %c0_37 = arith.constant 0 : index
    %89 = vector.load %arg11[%c0_36, %c0_37] : memref<1x256xf32, #tpu.memory_space<vmem>>, vector<1x256xf32>
    %90 = vector.broadcast %89 : vector<1x256xf32> to vector<8x256xf32>
    %91 = arith.addf %88, %90 : vector<8x256xf32>
    %cst_38 = arith.constant 5.000000e-01 : f32
    %92 = vector.broadcast %cst_38 : f32 to vector<8x256xf32>
    %93 = arith.mulf %92, %91 : vector<8x256xf32>
    %cst_39 = arith.constant 0.707106769 : f32
    %94 = vector.broadcast %cst_39 : f32 to vector<8x256xf32>
    %95 = arith.mulf %91, %94 : vector<8x256xf32>
    %96 = math.erf %95 : vector<8x256xf32>
    %cst_40 = arith.constant 1.000000e+00 : f32
    %97 = vector.broadcast %cst_40 : f32 to vector<8x256xf32>
    %98 = arith.addf %97, %96 : vector<8x256xf32>
    %99 = arith.mulf %93, %98 : vector<8x256xf32>
    %100 = arith.truncf %99 : vector<8x256xf32> to vector<8x256xbf16>
    %c0_41 = arith.constant 0 : index
    %c0_42 = arith.constant 0 : index
    %101 = vector.load %arg12[%c0_41, %c0_42] : memref<256x64xbf16, #tpu.memory_space<vmem>>, vector<256x64xbf16>
    %cst_43 = arith.constant dense<0.000000e+00> : vector<8x64xf32>
    %102 = tpu.matmul %100, %101, %cst_43 {dimension_numbers = #tpu.dot_dimension_numbers<[1], [0], [0], [1], [0, 0, 1, 1], [], []>} : vector<8x256xbf16>, vector<256x64xbf16>, vector<8x64xf32> -> vector<8x64xf32>
    %c0_44 = arith.constant 0 : index
    %c0_45 = arith.constant 0 : index
    %103 = vector.load %arg13[%c0_44, %c0_45] : memref<1x64xf32, #tpu.memory_space<vmem>>, vector<1x64xf32>
    %104 = vector.broadcast %103 : vector<1x64xf32> to vector<8x64xf32>
    %105 = arith.addf %102, %104 : vector<8x64xf32>
    %106 = arith.addf %105, %63 : vector<8x64xf32>
    %c0_46 = arith.constant 0 : index
    %c0_47 = arith.constant 0 : index
    %c0_48 = arith.constant 0 : index
    %107 = vector.load %arg14[%c0_46, %c0_47, %c0_48] : memref<1x8x64xf32, #tpu.memory_space<vmem>>, vector<1x8x64xf32>
    %108 = vector.shape_cast %107 : vector<1x8x64xf32> to vector<8x64xf32>
    %109 = vector.shape_cast %106 : vector<8x64xf32> to vector<1x8x64xf32>
    tpu.vector_store %arg14[%c0_46, %c0_47, %c0_48], %109 {strides = array<i32>} : memref<1x8x64xf32, #tpu.memory_space<vmem>>, vector<1x8x64xf32>,
    return
  }
  func.func @transform_0(%arg0: i32) -> (i32, i32, i32) {
    %c0_i32 = arith.constant 0 : i32
    %c0_i32_0 = arith.constant 0 : i32
    %c0_i32_1 = arith.constant 0 : i32
    return %arg0, %c0_i32, %c0_i32_0 : i32, i32, i32
  }
  func.func @transform_1(%arg0: i32) -> (i32, i32) {
    %c0_i32 = arith.constant 0 : i32
    %c0_i32_0 = arith.constant 0 : i32
    %c0_i32_1 = arith.constant 0 : i32
    return %c0_i32, %c0_i32_0 : i32, i32
  }
  func.func @transform_2(%arg0: i32) -> (i32, i32) {
    %c0_i32 = arith.constant 0 : i32
    %c0_i32_0 = arith.constant 0 : i32
    %c0_i32_1 = arith.constant 0 : i32
    return %c0_i32, %c0_i32_0 : i32, i32
  }
  func.func @transform_3(%arg0: i32) -> (i32, i32) {
    %c0_i32 = arith.constant 0 : i32
    %c0_i32_0 = arith.constant 0 : i32
    %c0_i32_1 = arith.constant 0 : i32
    return %c0_i32, %c0_i32_0 : i32, i32
  }
  func.func @transform_4(%arg0: i32) -> (i32, i32) {
    %c0_i32 = arith.constant 0 : i32
    %c0_i32_0 = arith.constant 0 : i32
    %c0_i32_1 = arith.constant 0 : i32
    return %c0_i32, %c0_i32_0 : i32, i32
  }
  func.func @transform_5(%arg0: i32) -> (i32, i32) {
    %c0_i32 = arith.constant 0 : i32
    %c0_i32_0 = arith.constant 0 : i32
    %c0_i32_1 = arith.constant 0 : i32
    return %c0_i32, %c0_i32_0 : i32, i32
  }
  func.func @transform_6(%arg0: i32) -> (i32, i32) {
    %c0_i32 = arith.constant 0 : i32
    %c0_i32_0 = arith.constant 0 : i32
    %c0_i32_1 = arith.constant 0 : i32
    return %c0_i32, %c0_i32_0 : i32, i32
  }
  func.func @transform_7(%arg0: i32) -> (i32, i32) {
    %c0_i32 = arith.constant 0 : i32
    %c0_i32_0 = arith.constant 0 : i32
    %c0_i32_1 = arith.constant 0 : i32
    return %c0_i32, %c0_i32_0 : i32, i32
  }
  func.func @transform_8(%arg0: i32) -> (i32, i32) {
    %c0_i32 = arith.constant 0 : i32
    %c0_i32_0 = arith.constant 0 : i32
    %c0_i32_1 = arith.constant 0 : i32
    return %c0_i32, %c0_i32_0 : i32, i32
  }
  func.func @transform_9(%arg0: i32) -> (i32, i32) {
    %c0_i32 = arith.constant 0 : i32
    %c0_i32_0 = arith.constant 0 : i32
    %c0_i32_1 = arith.constant 0 : i32
    return %c0_i32, %c0_i32_0 : i32, i32
  }
  func.func @transform_10(%arg0: i32) -> (i32, i32) {
    %c0_i32 = arith.constant 0 : i32
    %c0_i32_0 = arith.constant 0 : i32
    %c0_i32_1 = arith.constant 0 : i32
    return %c0_i32, %c0_i32_0 : i32, i32
  }
  func.func @transform_11(%arg0: i32) -> (i32, i32) {
    %c0_i32 = arith.constant 0 : i32
    %c0_i32_0 = arith.constant 0 : i32
    %c0_i32_1 = arith.constant 0 : i32
    return %c0_i32, %c0_i32_0 : i32, i32
  }
  func.func @transform_12(%arg0: i32) -> (i32, i32) {
    %c0_i32 = arith.constant 0 : i32
    %c0_i32_0 = arith.constant 0 : i32
    %c0_i32_1 = arith.constant 0 : i32
    return %c0_i32, %c0_i32_0 : i32, i32
  }
  func.func @transform_13(%arg0: i32) -> (i32, i32, i32) {
    %c0_i32 = arith.constant 0 : i32
    %c0_i32_0 = arith.constant 0 : i32
    %c0_i32_1 = arith.constant 0 : i32
    return %arg0, %c0_i32, %c0_i32_0 : i32, i32, i32
  }
}

</mosaic_0001>

<bundles_post_ra>
// kernel: tpu_custom_call.1
= control target key start
LH: loop header
LB: loop body
LE: loop exit
PB: predicated region body
PF: predicated region fallthrough
CT: control target
= control target key end

     0   :  { %s2944_s0 = inlined_call_operand.vmem [shape: f32[2,8,64], index: 0, kind: input, shape index: {}]   ;;  %s2945_s1 = inlined_call_operand.vmem [shape: f32[1,64], index: 1, kind: input, shape index: {}]   ;;  %s2946_s2 = inlined_call_operand.vmem [shape: f32[1,64], index: 2, kind: input, shape index: {}]   ;;  %s2947_s3 = inlined_call_operand.vmem [shape: bf16[64,192], index: 3, kind: input, shape index: {}]   ;;  %s2948_s4 = inlined_call_operand.vmem [shape: f32[1,192], index: 4, kind: input, shape index: {}]   ;;  %s2949_s5 = inlined_call_operand.vmem [shape: bf16[64,64], index: 5, kind: input, shape index: {}]   ;;  %s2950_s6 = inlined_call_operand.vmem [shape: f32[1,64], index: 6, kind: input, shape index: {}]   ;;  %s2951_s7 = inlined_call_operand.vmem [shape: f32[1,64], index: 7, kind: input, shape index: {}]   ;;  %s2952_s8 = inlined_call_operand.vmem [shape: f32[1,64], index: 8, kind: input, shape index: {}]   ;;  %s2953_s9 = inlined_call_operand.vmem [shape: bf16[64,256], index: 9, kind: input, shape index: {}]   ;;  %s2954_s10 = inlined_call_operand.vmem [shape: f32[1,256], index: 10, kind: input, shape index: {}]   ;;  %s2955_s11 = inlined_call_operand.vmem [shape: bf16[256,64], index: 11, kind: input, shape index: {}]   ;;  %s2956_s12 = inlined_call_operand.vmem [shape: f32[1,64], index: 12, kind: input, shape index: {}]   ;;  %s2957_s13 = inlined_call_operand.hbm [shape: f32[2,8,64], index: 13, kind: output, shape index: {}]  }
   0x1   :  { %2958 = sst [smem:[#allocation5_spill]] %s2944_s0 }
   0x2   :  { %2959 = sst [smem:[#allocation6_spill]] %s2945_s1 }
   0x3   :  { %2960 = sst [smem:[#allocation7_spill]] %s2946_s2 }
   0x4   :  { %18 = vsyncpa [#allocation3], 0 }
   0x5   :  { %20 = vsyncpa [#allocation3 + $0x1], 0  ;;  %s2518_s25 = smov 0   ;;  %s2520_s26 = smov 0  }
   0x6   :  { %s2522_s27 = smov 0   ;;  %s2524_s28 = smov 0  }
   0x7 LB: > { %s2539_s29 = sadd.s32 4294967295, %s2433_s28   ;;  %s2078_s30 = sadd.s32 4294967294, %s2433_s28   ;;  %s2433_s28 = sphi %s2524_s28, %s2969_s28   ;;  %s2429_s27 = sphi %s2522_s27, %s2968_s27   ;;  %s2425_s26 = sphi %s2520_s26, %s2967_s26   ;;  %s2421_s25 = sphi %s2518_s25, %s2966_s25  }
   0x8   : > { %s2543_s14 = sadd.s32 1, %s2433_s28   ;;  %s311_s15 = sadd.s32 1, %s2429_s27 }
   0x9   : > { %s308_s16 = ssub.s32 %s2433_s28, %s2543_s14  ;;  %p321_p0 = scmp.ne.s32.totalorder %s2429_s27, %s2425_s26 }
   0xa   : > { %p309_p1 = scmp.eq.s32.totalorder %s308_s16, 0  ;;  %p322_p2 = scmp.eq.s32.totalorder %s2539_s29, 1 }
   0xb   : > { %p327_p3 = scmp.ne.s32.totalorder %s2425_s26, %s2421_s25  ;;  %p328_p4 = scmp.eq.s32.totalorder %s2078_s30, 1 }
   0xc   : > { %s2554_s17 = scalar_select %p309_p1, %s2429_s27, %s311_s15  }
   0xd   : > { %p2556_p5 = por %p322_p2, %p321_p0  ;;  %p2560_p6 = por %p328_p4, %p327_p3 }
   0xe   : > { %p2081_p7 = scmp.ge.s32.totalorder %s2433_s28, 1  ;;  %p389_p8 = scmp.lt.s32.totalorder %s2433_s28, 3 }
  0x10   : > { %p390_p9 = pnand %p2081_p7, %p389_p8 }
  0x11   : > { %p432_p10 = scmp.lt.s32.totalorder (!%p390_p9), %s2539_s29, 1  ;;  %vm440_vm0 = vcmask (!%p390_p9), 523264   ;;  %s2963_s0 = sld [smem:[#allocation5_spill]] (!%p390_p9)  ;;  %v2303_v7 = vld [vmem:[%s2947_s3 + $0x4] ss:$8 sps:$4 sm:$0xff] (!%p390_p9)   ;;  %v2435_v11 = vmov (!%p390_p9), 0   ;;  %v480_v26 = vlaneseq (!%p390_p9) }
  0x12   : > { %393 = sbr.rel (%p390_p9) target bundleno = 2765 (0xacd), region = 72  ;;  %v2305_v8 = vld [vmem:[%s2947_s3] ss:$8 sps:$4 sm:$0xff] (!%p390_p9)   ;;  %v2306_v9 = vld [vmem:[%s2947_s3 + $0x14] ss:$8 sps:$4 sm:$0xff] (!%p390_p9)   ;;  %533 = vmatprep.subr.bf16.mxu1 (!%p390_p9), %v2303_v7  ;;  %565 = vmatprep.mubr.bf16.mxu1 (!%p390_p9), %v2435_v11  ;;  %s2964_s1 = sld [smem:[#allocation6_spill]] (!%p390_p9) }
  0x13   : > { %534 = vmatpush1.bf16.msra.mxu1 (!%p390_p9), %v2305_v8  ;;  %v2308_v10 = vld [vmem:[%s2947_s3 + $0x10] ss:$8 sps:$4 sm:$0xff] (!%p390_p9)   ;;  %v2309_v12 = vld [vmem:[%s2947_s3 + $0x24] ss:$8 sps:$4 sm:$0xff] (!%p390_p9)   ;;  %v2311_v13 = vld [vmem:[%s2947_s3 + $0x20] ss:$8 sps:$4 sm:$0xff] (!%p390_p9)  }
  0x14   : > { %535 = vmatprep.subr.bf16.mxu1 (!%p390_p9), %v2306_v9  ;;  %v2312_v14 = vld [vmem:[%s2947_s3 + $0x34] ss:$8 sps:$4 sm:$0xff] (!%p390_p9)   ;;  %v2314_v15 = vld [vmem:[%s2947_s3 + $0x30] ss:$8 sps:$4 sm:$0xff] (!%p390_p9)   ;;  %s2965_s2 = sld [smem:[#allocation7_spill]] (!%p390_p9)  ;;  %v2609_v27 = vshrl.u32 (!%p390_p9), %v480_v26, 7 }
  0x15   : > { %v2615_v29 = vld [vmem:[%s2948_s4] sm:$0x3] (!%p390_p9)  ;;  %s2436_s23 = smov (!%p390_p9), 80   ;;  %s2438_s30 = smov (!%p390_p9), 96   ;;  %v2440_v36 = vmov (!%p390_p9), 1983009808  }
  0x16   : > { %v482_v28 = vsub.s32 (!%p390_p9), 0, %v2609_v27  ;;  %s2439_s15 = smov (!%p390_p9), 64   ;;  %v587_v37 = vunpack.c.l.s4 (!%p390_p9), %v2440_v36  ;;  %v2441_v39 = vmov (!%p390_p9), 1934713408   ;;  %v2442_v55 = vmov (!%p390_p9), 0.0   ;;  %s2444_s16 = smov (!%p390_p9), 32  }
  0x17   : > { %536 = vmatpush1.bf16.msra.mxu1 (!%p390_p9), %v2308_v10  ;;  %v619_v40 = vunpack.c.l.s4 (!%p390_p9), %v2441_v39  ;;  %2204 = vmatprep.subr.bf16.mxu0 (!%p390_p9), %v2442_v55  ;;  %vm2443_vm1 = vmmov (!%p390_p9), 0   ;;  %vm1026_vm2 = vcmask (!%p390_p9), 130048   ;;  %vm1211_vm3 = vcmask (!%p390_p9), 64512  }
  0x18   : > { %537 = vmatprep.subr.bf16.mxu1 (!%p390_p9), %v2309_v12  ;;  %v2084_v20 = vld [vmem:[%s2964_s1] ss:$0 sm:$0xff] (!%p390_p9)  ;;  %v483_v30 = vrot.slane (!%p390_p9), %v2615_v29, %v482_v28  ;;  %v588_v38 = vunpack.c.0.s8 (!%p390_p9), %v587_v37  ;;  %2206 = vmatprep.mubr.msk.bf16.mxu0 (!%p390_p9), %vm2443_vm1, %v2442_v55  ;;  %vm1263_vm4 = vcmask (!%p390_p9), 1043456   ;;  %vm1594_vm5 = vcmask (!%p390_p9), 261120  }
  0x19   : > { %s433_s20 = scalar_select %p432_p10, %s2539_s29, 1  ;;  %v620_v44 = vunpack.c.0.s8 %v619_v40  ;;  %vm1596_vm6 = vcmask 392192  }
  0x1a   : > { %v2085_v22 = vld [vmem:[%s2965_s2] ss:$0 sm:$0xff]  ;;  %v2626_v43 = vsub.s32 %v588_v38, %v2609_v27 }
  0x1b   : > { %s2083_s21 = sshll.u32 %s433_s20, 3  ;;  %538 = vmatpush1.bf16.msra.mxu1 %v2311_v13  ;;  %v2629_v50 = vsub.s32 %v620_v44, %v2609_v27  ;;  %s2445_s20 = smov 16  }
  0x1c   : > { %s435_s24 = scalar_lea.vmem %s2963_s0, %s2083_s21  ;;  %539 = vmatprep.subr.bf16.mxu1 %v2312_v14  ;;  %s2446_s21 = smov 48  }
  0x1d   : > { %v2571_v0 = vld [vmem:[%s435_s24] sm:$0xff]  ;;  %s2437_s24 = smov 112   ;;  %s2146_s0 = sshll.u32 %s2539_s29, 7 }
  0x1e   : > { %v441_v1 = vsel %vm440_vm0, %v2571_v0, 0.0  ;;  %s2447_s29 = smov [#allocation2]  }
  0x1f   : > { %442 = vadd.xlane.f32.xlu0 %v441_v1  ;;  %540 = vmatpush1.bf16.msra.mxu1 %v2314_v15 }
  0x20   : > { %2192 = vmatprep.subr.bf16.mxu1 %v2442_v55 }
  0xac   : > { %v443_v2 = vpop.xlane.xlu0 %442 }
  0xad   : > { %v445_v3 = vmul.f32 0.015625, %v443_v2 }
  0xaf   : > { %v446_v4 = vsub.f32 %v2571_v0, %v445_v3 }
  0xb1   : > { %v447_v5 = vmul.f32 %v446_v4, %v446_v4 }
  0xb3   : > { %v448_v6 = vsel %vm440_vm0, %v447_v5, 0.0 }
  0xb4   : > { %449 = vadd.xlane.f32.xlu0 %v448_v6 }
 0x141   : > { %v450_v16 = vpop.xlane.xlu0 %449 }
 0x142   : > { %v451_v17 = vmul.f32 0.015625, %v450_v16 }
 0x144   : > { %v452_v18 = vadd.f32 1e-06, %v451_v17 }
 0x146   : > { %2347 = vrsqrt.f32 %v452_v18 }
 0x150   : > { %v2348_v19 = vpop.eup %2347 }
 0x151   : > { %v454_v21 = vmul.f32 %v2348_v19, %v446_v4 }
 0x153   : > { %v461_v23 = vmul.f32 %v2084_v20, %v454_v21 }
 0x155   : > { %v468_v24 = vadd.f32 %v2085_v22, %v461_v23 }
 0x157   : > { %v469_v25 = vpack.c.bf16 %v468_v24, %v468_v24 }
 0x159   : > { %2094 = vmatmul.mubr.msk.bf16.vlgmr.msra.gmra.mrb[0].mxu1 %vm440_vm0, %v469_v25 }
 0x15a   : > { %2194 = vmatprep.mubr.msk.bf16.mxu1 %vm2443_vm1, %v2442_v55 }
 0x22c   : > { %v567_v31 = vpop.f32.mrb[0].mxu1 }
 0x22d   : > { %v568_v32 = vadd.f32 %v567_v31, %v483_v30  ;;  %v2620_v33 = vpop.f32.mrb[1].mxu1 }
 0x22e   : > { %v571_v34 = vpop.f32.mrb[2].mxu1 }
 0x22f   : > { %v572_v35 = vpop.f32.mrb[3].mxu1  ;;  %581 = vrot.lane.b32.xlu0 %v568_v32, %s2436_s23  ;;  %575 = vrot.lane.b32.xlu1 %v568_v32, %s2437_s24 }
 0x233   : > { %578 = vrot.lane.b32.xlu1 %v568_v32, %s2438_s30 }
 0x237   : > { %724 = vrot.lane.b32.xlu1 %v568_v32, %s2439_s15 }
 0x2a1   : > { %v582_v41 = vpop.permute.xlu0 %581  ;;  %v576_v42 = vpop.permute.xlu1 %575 }
 0x2a2   : > { %726 = vrot.lane.b32.xlu1 %v576_v42, %s2439_s15  ;;  %v600_v45 = vcombine.low %v576_v42, %v582_v41  ;;  %v601_v46 = vcombine.high %v576_v42, %v582_v41 }
 0x2a4   : > { %v608_v51 = vrot.slane %v600_v45, %v2626_v43  ;;  %v615_v52 = vrot.slane %v601_v46, %v2626_v43 }
 0x2a5   : > { %v579_v47 = vpop.permute.xlu1 %578 }
 0x2a6   : > { %v584_v48 = vcombine.low %v568_v32, %v579_v47  ;;  %v585_v49 = vcombine.high %v568_v32, %v579_v47  ;;  %728 = vrot.lane.b32.xlu1 %v579_v47, %s2439_s15 }
 0x2a8   : > { %v592_v53 = vrot.slane %v584_v48, %v2626_v43  ;;  %v599_v54 = vrot.slane %v585_v49, %v2626_v43 }
 0x2a9   : > { %v725_v22 = vpop.permute.xlu1 %724 }
 0x2aa   : > { %v616_v56 = vcombine.low %v592_v53, %v608_v51  ;;  %v617_v57 = vcombine.high %v592_v53, %v608_v51  ;;  %v632_v58 = vcombine.low %v599_v54, %v615_v52  ;;  %v633_v59 = vcombine.high %v599_v54, %v615_v52  ;;  %730 = vrot.lane.b32.xlu1 %v582_v41, %s2439_s15 }
 0x2ac   : > { %v624_v60 = vrot.slane %v616_v56, %v2629_v50  ;;  %v631_v61 = vrot.slane %v617_v57, %v2629_v50  ;;  %v640_v62 = vrot.slane %v632_v58, %v2629_v50  ;;  %v647_v63 = vrot.slane %v633_v59, %v2629_v50 }
 0x2ae   : > { %v652_v1 = vcombine.low %v624_v60, %v631_v61  ;;  %v2095_v2 = vcombine.high %v624_v60, %v631_v61  ;;  %v668_v3 = vcombine.low %v640_v62, %v647_v63  ;;  %v2096_v4 = vcombine.high %v640_v62, %v647_v63 }
 0x2b0   : > { %v659_v5 = vrot.slane %v652_v1, %v2626_v43  ;;  %v667_v6 = vrot.slane %v2095_v2, %v2626_v43  ;;  %v675_v7 = vrot.slane %v668_v3, %v2626_v43  ;;  %v683_v8 = vrot.slane %v2096_v4, %v2626_v43 }
 0x2b2   : > { %v684_v9 = vcombine.low %v659_v5, %v667_v6  ;;  %v700_v10 = vcombine.low %v675_v7, %v683_v8  ;;  %v685_v12 = vcombine.high %v659_v5, %v667_v6  ;;  %v701_v13 = vcombine.high %v675_v7, %v683_v8 }
 0x2b4   : > { %v692_v14 = vrot.slane %v684_v9, %v2629_v50  ;;  %v708_v15 = vrot.slane %v700_v10, %v2629_v50  ;;  %v699_v16 = vrot.slane %v685_v12, %v2629_v50  ;;  %v715_v17 = vrot.slane %v701_v13, %v2629_v50 }
 0x2b6   : > { %v716_v18 = vcombine.low %v692_v14, %v708_v15  ;;  %v2653_v19 = vcombine.high %v692_v14, %v708_v15  ;;  %v718_v20 = vcombine.low %v699_v16, %v715_v17  ;;  %v2655_v21 = vcombine.high %v699_v16, %v715_v17 }
 0x2b8   : > { %v720_v10 = vpack.c.bf16 %v716_v18, %v716_v18  ;;  %v722_v12 = vpack.c.bf16 %v718_v20, %v718_v20  ;;  %v721_v16 = vpack.c.bf16 %v2653_v19, %v2653_v19  ;;  %v723_v18 = vpack.c.bf16 %v2655_v21, %v2655_v21 }
 0x314   : > { %v727_v23 = vpop.permute.xlu1 %726 }
 0x318   : > { %v729_v24 = vpop.permute.xlu1 %728 }
 0x319   : > { %v736_v25 = vcombine.low %v725_v22, %v729_v24  ;;  %v737_v26 = vcombine.high %v725_v22, %v729_v24 }
 0x31b   : > { %v744_v34 = vrot.slane %v736_v25, %v2626_v43  ;;  %v751_v35 = vrot.slane %v737_v26, %v2626_v43 }
 0x31c   : > { %v731_v30 = vpop.permute.xlu1 %730 }
 0x31d   : > { %v752_v31 = vcombine.low %v727_v23, %v731_v30  ;;  %v753_v32 = vcombine.high %v727_v23, %v731_v30 }
 0x31f   : > { %v760_v36 = vrot.slane %v752_v31, %v2626_v43  ;;  %v767_v37 = vrot.slane %v753_v32, %v2626_v43 }
 0x321   : > { %v768_v38 = vcombine.low %v744_v34, %v760_v36  ;;  %v769_v39 = vcombine.high %v744_v34, %v760_v36  ;;  %v784_v40 = vcombine.low %v751_v35, %v767_v37  ;;  %v785_v41 = vcombine.high %v751_v35, %v767_v37 }
 0x323   : > { %v776_v42 = vrot.slane %v768_v38, %v2629_v50  ;;  %v783_v44 = vrot.slane %v769_v39, %v2629_v50  ;;  %v792_v45 = vrot.slane %v784_v40, %v2629_v50  ;;  %v799_v46 = vrot.slane %v785_v41, %v2629_v50 }
 0x324   : > { %v486_v38 = vsub.s32 1, %v2609_v27 }
 0x325   : > { %v804_v47 = vcombine.low %v776_v42, %v783_v44  ;;  %v2097_v48 = vcombine.high %v776_v42, %v783_v44  ;;  %v820_v49 = vcombine.low %v792_v45, %v799_v46  ;;  %v2098_v51 = vcombine.high %v792_v45, %v799_v46 }
 0x326   : > { %v487_v40 = vrot.slane %v2615_v29, %v486_v38 }
 0x327   : > { %v811_v52 = vrot.slane %v804_v47, %v2626_v43  ;;  %v819_v53 = vrot.slane %v2097_v48, %v2626_v43  ;;  %v827_v54 = vrot.slane %v820_v49, %v2626_v43  ;;  %v835_v56 = vrot.slane %v2098_v51, %v2626_v43 }
 0x328   : > { %v570_v46 = vadd.f32 %v2620_v33, %v487_v40 }
 0x329   : > { %v836_v57 = vcombine.low %v811_v52, %v819_v53  ;;  %v852_v58 = vcombine.low %v827_v54, %v835_v56  ;;  %v837_v59 = vcombine.high %v811_v52, %v819_v53  ;;  %v853_v60 = vcombine.high %v827_v54, %v835_v56 }
 0x32b   : > { %v844_v61 = vrot.slane %v836_v57, %v2629_v50  ;;  %v860_v62 = vrot.slane %v852_v58, %v2629_v50  ;;  %v851_v63 = vrot.slane %v837_v59, %v2629_v50  ;;  %v867_v1 = vrot.slane %v853_v60, %v2629_v50 }
 0x32d   : > { %v868_v2 = vcombine.low %v844_v61, %v860_v62  ;;  %v870_v3 = vcombine.low %v851_v63, %v867_v1  ;;  %v869_v8 = vcombine.high %v844_v61, %v860_v62  ;;  %v871_v14 = vcombine.high %v851_v63, %v867_v1 }
 0x32f   : > { %v872_v4 = vpack.c.bf16 %v868_v2, %v868_v2  ;;  %v874_v5 = vpack.c.bf16 %v870_v3, %v870_v3  ;;  %v873_v9 = vpack.c.bf16 %v869_v8, %v869_v8  ;;  %v875_v15 = vpack.c.bf16 %v871_v14, %v871_v14 }
 0x331   : > { %v1031_v6 = vsel %vm1026_vm2, %v872_v4, 0  ;;  %v1123_v7 = vsel %vm1026_vm2, %v874_v5, 0  ;;  %v1077_v13 = vsel %vm1026_vm2, %v873_v9, 0  ;;  %v1169_v17 = vsel %vm1026_vm2, %v875_v15, 0 }
 0x332   : > { %2193 = vmatpush3.bf16.xpose.msra.mxu1 %v1031_v6  ;;  %2205 = vmatpush3.bf16.xpose.msra.mxu0 %v1123_v7 }
 0x333   : > { %2198 = vmatprep.subr.bf16.mxu1 %v2442_v55  ;;  %2216 = vmatprep.subr.bf16.mxu0 %v2442_v55 }
 0x339   : > { %2195 = vmatmul.mubr.msk.bf16.vlgmr.msra.gmra.mrb[4].mxu1 %vm1026_vm2, %v720_v10  ;;  %2207 = vmatmul.mubr.msk.bf16.vlgmr.msra.gmra.mrb[0].mxu0 %vm1026_vm2, %v722_v12 }
 0x33a   : > { %2199 = vmatpush3.bf16.xpose.msra.mxu1 %v1077_v13  ;;  %2200 = vmatprep.mubr.msk.bf16.mxu1 %vm2443_vm1, %v2442_v55 }
 0x33b   : > { %2210 = vmatprep.subr.bf16.mxu1 %v2442_v55  ;;  %2218 = vmatprep.mubr.msk.bf16.mxu0 %vm2443_vm1, %v2442_v55 }
 0x341   : > { %2201 = vmatmul.mubr.msk.bf16.vlgmr.msra.gmra.mrb[8].mxu1 %vm1026_vm2, %v721_v16 }
 0x342   : > { %2211 = vmatpush3.bf16.xpose.msra.mxu1 %v1169_v17  ;;  %2212 = vmatprep.mubr.msk.bf16.mxu1 %vm2443_vm1, %v2442_v55 }
 0x343   : > { %2222 = vmatprep.subr.bf16.mxu1 %v2442_v55 }
 0x349   : > { %2213 = vmatmul.mubr.msk.bf16.vlgmr.msra.gmra.mrb[12].mxu1 %vm1026_vm2, %v723_v18 }
 0x34a   : > { %2224 = vmatprep.mubr.msk.bf16.mxu1 %vm2443_vm1, %v2442_v55 }
 0x40c   : > { %v1067_v19 = vpop.f32.mrb[4].mxu1  ;;  %v1159_v20 = vpop.f32.mrb[0].mxu0 }
 0x40d   : > { %v2196_v22 = vpop.f32.mrb[5].mxu1  ;;  %v2208_v23 = vpop.f32.mrb[1].mxu0  ;;  %v1212_v24 = vsel %vm1211_vm3, %v1067_v19, -inf  ;;  %v1218_v32 = vsel %vm1211_vm3, %v1159_v20, -inf }
 0x40e   : > { %v1162_v25 = vpop.f32.mrb[2].mxu0  ;;  %1213 = vmax.xlane.f32.xlu1 %v1212_v24  ;;  %v1070_v26 = vpop.f32.mrb[6].mxu1 }
 0x40f   : > { %v2197_v30 = vpop.f32.mrb[7].mxu1  ;;  %v2209_v31 = vpop.f32.mrb[3].mxu0 }
 0x412   : > { %1219 = vmax.xlane.f32.xlu1 %v1218_v32 }
 0x414   : > { %v1113_v21 = vpop.f32.mrb[8].mxu1 }
 0x415   : > { %v2202_v34 = vpop.f32.mrb[9].mxu1  ;;  %v1215_v35 = vsel %vm1211_vm3, %v1113_v21, -inf }
 0x416   : > { %1216 = vmax.xlane.f32.xlu0 %v1215_v35  ;;  %v1116_v36 = vpop.f32.mrb[10].mxu1 }
 0x417   : > { %v2203_v37 = vpop.f32.mrb[11].mxu1 }
 0x41c   : > { %v1205_v39 = vpop.f32.mrb[12].mxu1 }
 0x41d   : > { %v2214_v41 = vpop.f32.mrb[13].mxu1  ;;  %v1221_v42 = vsel %vm1211_vm3, %v1205_v39, -inf }
 0x41e   : > { %1222 = vmax.xlane.f32.xlu0 %v1221_v42  ;;  %v1208_v44 = vpop.f32.mrb[14].mxu1 }
 0x41f   : > { %v2215_v45 = vpop.f32.mrb[15].mxu1 }
 0x423   : > { %877 = vrot.lane.b32.xlu1 %v570_v46, %s2437_s24 }
 0x49b   : > { %v1214_v47 = vpop.xlane.xlu1 %1213 }
 0x49c   : > { %v1224_v48 = vsub.f32 %v1067_v19, %v1214_v47 }
 0x49e   : > { %v1228_v49 = vmul.f32 1.442695, %v1224_v48 }
 0x49f   : > { %v1220_v57 = vpop.xlane.xlu1 %1219 }
 0x4a0   : > { %2349 = vpow2.f32 %v1228_v49  ;;  %v1226_v58 = vsub.f32 %v1159_v20, %v1220_v57 }
 0x4a2   : > { %v1232_v59 = vmul.f32 1.442695, %v1226_v58 }
 0x4a3   : > { %v1217_v51 = vpop.xlane.xlu0 %1216  ;;  %v878_v4 = vpop.permute.xlu1 %877 }
 0x4a4   : > { %v1225_v52 = vsub.f32 %v1113_v21, %v1217_v51 }
 0x4a6   : > { %v1230_v53 = vmul.f32 1.442695, %v1225_v52 }
 0x4a8   : > { %2351 = vpow2.f32 %v1230_v53 }
 0x4a9   : > { %2353 = vpow2.f32 %v1232_v59 }
 0x4aa   : > { %v2707_v54 = vpop.eup %2349 }
 0x4ab   : > { %v1236_v29 = vsel %vm1211_vm3, %v2707_v54, 0.0  ;;  %v1223_v60 = vpop.xlane.xlu0 %1222 }
 0x4ac   : > { %1237 = vadd.xlane.f32.xlu1 %v1236_v29  ;;  %v1227_v61 = vsub.f32 %v1205_v39, %v1223_v60 }
 0x4ae   : > { %v1234_v62 = vmul.f32 1.442695, %v1227_v61 }
 0x4b0   : > { %2355 = vpow2.f32 %v1234_v62 }
 0x4b2   : > { %v2711_v56 = vpop.eup %2351 }
 0x4b3   : > { %v1239_v33 = vsel %vm1211_vm3, %v2711_v56, 0.0  ;;  %v2717_v63 = vpop.eup %2353 }
 0x4b4   : > { %1240 = vadd.xlane.f32.xlu0 %v1239_v33  ;;  %v1242_v1 = vsel %vm1211_vm3, %v2717_v63, 0.0 }
 0x4ba   : > { %v2721_v2 = vpop.eup %2355 }
 0x4bb   : > { %v1245_v3 = vsel %vm1211_vm3, %v2721_v2, 0.0 }
 0x4bd   : > { %883 = vrot.lane.b32.xlu1 %v570_v46, %s2436_s23 }
 0x4ca   : > { %880 = vrot.lane.b32.xlu0 %v570_v46, %s2438_s30 }
 0x4e1   : > { %1243 = vadd.xlane.f32.xlu1 %v1242_v1 }
 0x4e9   : > { %1246 = vadd.xlane.f32.xlu0 %v1245_v3 }
 0x539   : > { %v1238_v5 = vpop.xlane.xlu1 %1237 }
 0x53a   : > { %2357 = vrcp.f32 %v1238_v5 }
 0x53d   : > { %v884_v6 = vpop.permute.xlu1 %883 }
 0x53e   : > { %v902_v8 = vcombine.low %v878_v4, %v884_v6  ;;  %v903_v9 = vcombine.high %v878_v4, %v884_v6 }
 0x540   : > { %v910_v14 = vrot.slane %v902_v8, %v2626_v43  ;;  %v917_v15 = vrot.slane %v903_v9, %v2626_v43 }
 0x541   : > { %v1241_v7 = vpop.xlane.xlu0 %1240 }
 0x542   : > { %2359 = vrcp.f32 %v1241_v7 }
 0x544   : > { %v2358_v44 = vpop.eup %2357 }
 0x545   : > { %v881_v10 = vpop.permute.xlu0 %880  ;;  %v1252_v33 = vmul.f32 %v2358_v44, %v2707_v54 }
 0x546   : > { %v886_v12 = vcombine.low %v570_v46, %v881_v10  ;;  %v887_v13 = vcombine.high %v570_v46, %v881_v10 }
 0x547   : > { %v1256_v3 = vpack.c.bf16 %v1252_v33, %v1252_v33 }
 0x548   : > { %v894_v16 = vrot.slane %v886_v12, %v2626_v43  ;;  %v901_v17 = vrot.slane %v887_v13, %v2626_v43 }
 0x54a   : > { %v918_v18 = vcombine.low %v894_v16, %v910_v14  ;;  %v919_v19 = vcombine.high %v894_v16, %v910_v14  ;;  %v934_v20 = vcombine.low %v901_v17, %v917_v15  ;;  %v935_v22 = vcombine.high %v901_v17, %v917_v15  ;;  %v2315_v14 = vld [vmem:[%s2949_s5] sm:$0xff]  }
 0x54c   : > { %v926_v23 = vrot.slane %v918_v18, %v2629_v50  ;;  %v933_v24 = vrot.slane %v919_v19, %v2629_v50  ;;  %v942_v25 = vrot.slane %v934_v20, %v2629_v50  ;;  %v949_v26 = vrot.slane %v935_v22, %v2629_v50  ;;  %v2360_v49 = vpop.eup %2359 }
 0x54d   : > { %v1253_v57 = vmul.f32 %v2360_v49, %v2711_v56 }
 0x54e   : > { %v954_v30 = vcombine.low %v926_v23, %v933_v24  ;;  %v2099_v31 = vcombine.high %v926_v23, %v933_v24  ;;  %v970_v32 = vcombine.low %v942_v25, %v949_v26  ;;  %v2100_v21 = vcombine.high %v942_v25, %v949_v26 }
 0x54f   : > { %v1257_v4 = vpack.c.bf16 %v1253_v57, %v1253_v57 }
 0x550   : > { %v961_v34 = vrot.slane %v954_v30, %v2626_v43  ;;  %v969_v35 = vrot.slane %v2099_v31, %v2626_v43  ;;  %v977_v36 = vrot.slane %v970_v32, %v2626_v43  ;;  %v985_v37 = vrot.slane %v2100_v21, %v2626_v43 }
 0x552   : > { %v986_v39 = vcombine.low %v961_v34, %v969_v35  ;;  %v1002_v40 = vcombine.low %v977_v36, %v985_v37  ;;  %v987_v41 = vcombine.high %v961_v34, %v969_v35  ;;  %v1003_v42 = vcombine.high %v977_v36, %v985_v37 }
 0x554   : > { %v994_v45 = vrot.slane %v986_v39, %v2629_v50  ;;  %v1010_v46 = vrot.slane %v1002_v40, %v2629_v50  ;;  %v1001_v47 = vrot.slane %v987_v41, %v2629_v50  ;;  %v1017_v48 = vrot.slane %v1003_v42, %v2629_v50 }
 0x556   : > { %v1018_v51 = vcombine.low %v994_v45, %v1010_v46  ;;  %v1019_v52 = vcombine.high %v994_v45, %v1010_v46  ;;  %v1020_v53 = vcombine.low %v1001_v47, %v1017_v48  ;;  %v1021_v29 = vcombine.high %v1001_v47, %v1017_v48  ;;  %v2317_v47 = vld [vmem:[%s2949_s5 + $0x10] sm:$0xff]  }
 0x558   : > { %v1022_v58 = vpack.c.bf16 %v1018_v51, %v1018_v51  ;;  %v1023_v59 = vpack.c.bf16 %v1019_v52, %v1019_v52  ;;  %v1024_v62 = vpack.c.bf16 %v1020_v53, %v1020_v53  ;;  %v1025_v1 = vpack.c.bf16 %v1021_v29, %v1021_v29 }
 0x55a   : > { %v1265_v60 = vsel %vm1263_vm4, %v1022_v58, 0  ;;  %v1311_v61 = vsel %vm1263_vm4, %v1023_v59, 0  ;;  %v1357_v54 = vsel %vm1263_vm4, %v1024_v62, 0  ;;  %v1403_v56 = vsel %vm1263_vm4, %v1025_v1, 0  ;;  %v2318_v58 = vld [vmem:[%s2949_s5 + $0x18] sm:$0xff]  }
 0x55b   : > { %2217 = vmatpush3.bf16.msra.mxu0 %v1265_v60  ;;  %2223 = vmatpush3.bf16.msra.mxu1 %v1311_v61 }
 0x55c   : > { %2228 = vmatprep.subr.bf16.mxu0 %v2442_v55  ;;  %2234 = vmatprep.subr.bf16.mxu1 %v2442_v55 }
 0x55e   : > { %2219 = vmatmul.mubr.msk.bf16.vlgmr.msra.gmra.mrb[4].mxu0 %vm1211_vm3, %v1256_v3  ;;  %2225 = vmatmul.mubr.msk.bf16.vlgmr.msra.gmra.mrb[16].mxu1 %vm1211_vm3, %v1257_v4 }
 0x55f   : > { %2229 = vmatpush3.bf16.msra.mxu0 %v1357_v54  ;;  %2235 = vmatpush3.bf16.msra.mxu1 %v1403_v56 }
 0x560   : > { %2230 = vmatprep.mubr.msk.bf16.mxu0 %vm2443_vm1, %v2442_v55  ;;  %2236 = vmatprep.mubr.msk.bf16.mxu1 %vm2443_vm1, %v2442_v55 }
 0x561   : > { %2240 = vmatprep.subr.bf16.mxu0 %v2442_v55 }
 0x56e   : > { %v1244_v5 = vpop.xlane.xlu1 %1243 }
 0x56f   : > { %2361 = vrcp.f32 %v1244_v5 }
 0x576   : > { %v1247_v6 = vpop.xlane.xlu0 %1246 }
 0x577   : > { %2363 = vrcp.f32 %v1247_v6 }
 0x579   : > { %v2362_v7 = vpop.eup %2361 }
 0x57a   : > { %v1254_v8 = vmul.f32 %v2362_v7, %v2717_v63  ;;  %v2316_v63 = vld [vmem:[%s2949_s5 + $0x8] sm:$0xff]  }
 0x57c   : > { %v1258_v9 = vpack.c.bf16 %v1254_v8, %v1254_v8 }
 0x57e   : > { %2231 = vmatmul.mubr.msk.bf16.vlgmr.msra.gmra.mrb[8].mxu0 %vm1211_vm3, %v1258_v9 }
 0x57f   : > { %2248 = vmatprep.mubr.msk.bf16.mxu0 %vm2443_vm1, %v2442_v55  ;;  %2241 = vmatpush3.bf16.msra.mxu0 %v2315_v14 }
 0x580   : > { %2242 = vmatprep.subr.bf16.mxu0 %v2442_v55 }
 0x581   : > { %v2364_v10 = vpop.eup %2363 }
 0x582   : > { %v1255_v12 = vmul.f32 %v2364_v10, %v2721_v2 }
 0x583   : > { %2243 = vmatpush3.bf16.msra.mxu0 %v2316_v63 }
 0x584   : > { %v1259_v13 = vpack.c.bf16 %v1255_v12, %v1255_v12  ;;  %2244 = vmatprep.subr.bf16.mxu0 %v2442_v55 }
 0x586   : > { %2237 = vmatmul.mubr.msk.bf16.vlgmr.msra.gmra.mrb[20].mxu1 %vm1211_vm3, %v1259_v13 }
 0x587   : > { %1807 = vmatprep.mubr.bf16.mxu1 %v2435_v11  ;;  %2245 = vmatpush3.bf16.msra.mxu0 %v2317_v47 }
 0x588   : > { %2246 = vmatprep.subr.bf16.mxu0 %v2442_v55 }
 0x58b   : > { %2247 = vmatpush3.bf16.msra.mxu0 %v2318_v58  ;;  %v2337_v58 = vld [vmem:[%s2955_s11 + $0x58] sm:$0xff]  }
 0x631   : > { %v1301_v2 = vpop.f32.mrb[4].mxu0  ;;  %v1347_v15 = vpop.f32.mrb[16].mxu1 }
 0x632   : > { %v2220_v16 = vpop.f32.mrb[5].mxu0  ;;  %v2226_v17 = vpop.f32.mrb[17].mxu1 }
 0x633   : > { %v1304_v18 = vpop.f32.mrb[6].mxu0  ;;  %v1350_v11 = vpop.f32.mrb[18].mxu1 }
 0x634   : > { %v2221_v19 = vpop.f32.mrb[7].mxu0  ;;  %v2227_v20 = vpop.f32.mrb[19].mxu1 }
 0x651   : > { %v1393_v22 = vpop.f32.mrb[8].mxu0 }
 0x652   : > { %v1445_v23 = vcombine.low %v1301_v2, %v1393_v22  ;;  %v1446_v24 = vcombine.high %v1301_v2, %v1393_v22  ;;  %v2232_v25 = vpop.f32.mrb[9].mxu0 }
 0x653   : > { %v1396_v26 = vpop.f32.mrb[10].mxu0 }
 0x654   : > { %v2233_v30 = vpop.f32.mrb[11].mxu0  ;;  %v1453_v36 = vrot.slane %v1445_v23, %v2626_v43  ;;  %v1460_v37 = vrot.slane %v1446_v24, %v2626_v43 }
 0x659   : > { %v1439_v31 = vpop.f32.mrb[20].mxu1 }
 0x65a   : > { %v1461_v32 = vcombine.low %v1347_v15, %v1439_v31  ;;  %v1462_v21 = vcombine.high %v1347_v15, %v1439_v31  ;;  %v2238_v34 = vpop.f32.mrb[21].mxu1  ;;  %v2111_v15 = vld [vmem:[%s2950_s6] ss:$0 sm:$0xff]  ;;  %v2321_v31 = vld [vmem:[%s2953_s9 + $0x4] ss:$8 sps:$4 sm:$0xff]  }
 0x65b   : > { %v1442_v35 = vpop.f32.mrb[22].mxu1  ;;  %1775 = vmatprep.subr.bf16.mxu1 %v2321_v31  ;;  %v2327_v34 = vld [vmem:[%s2953_s9 + $0x24] ss:$8 sps:$4 sm:$0xff]  }
 0x65c   : > { %v1469_v39 = vrot.slane %v1461_v32, %v2626_v43  ;;  %v1476_v40 = vrot.slane %v1462_v21, %v2626_v43  ;;  %v2239_v41 = vpop.f32.mrb[23].mxu1  ;;  %v2324_v32 = vld [vmem:[%s2953_s9 + $0x14] ss:$8 sps:$4 sm:$0xff]   ;;  %v2322_v21 = vld [vmem:[%s2953_s9 + $0x10] ss:$8 sps:$4 sm:$0xff]  }
 0x65d   : > { %v2325_v35 = vld [vmem:[%s2953_s9 + $0x20] ss:$8 sps:$4 sm:$0xff]  }
 0x65e   : > { %v1477_v42 = vcombine.low %v1453_v36, %v1469_v39  ;;  %v1478_v44 = vcombine.high %v1453_v36, %v1469_v39  ;;  %v1493_v45 = vcombine.low %v1460_v37, %v1476_v40  ;;  %v1494_v46 = vcombine.high %v1460_v37, %v1476_v40  ;;  %v2328_v36 = vld [vmem:[%s2953_s9 + $0x30] ss:$8 sps:$4 sm:$0xff]   ;;  %v2330_v37 = vld [vmem:[%s2953_s9 + $0x34] ss:$8 sps:$4 sm:$0xff]   ;;  %v2331_v39 = vld [vmem:[%s2955_s11 + $0x40] sm:$0xff]  }
 0x65f   : > { %v2332_v40 = vld [vmem:[%s2955_s11] sm:$0xff]   ;;  %v2333_v41 = vld [vmem:[%s2955_s11 + $0x48] sm:$0xff]   ;;  %2170 = vmatprep.subr.bf16.mxu0 %v2331_v39 }
 0x660   : > { %v1485_v48 = vrot.slane %v1477_v42, %v2629_v50  ;;  %v1492_v49 = vrot.slane %v1478_v44, %v2629_v50  ;;  %v1501_v51 = vrot.slane %v1493_v45, %v2629_v50  ;;  %v1508_v52 = vrot.slane %v1494_v46, %v2629_v50  ;;  %v2334_v42 = vld [vmem:[%s2955_s11 + $0x8] sm:$0xff]  }
 0x662   : > { %v1513_v53 = vcombine.low %v1485_v48, %v1492_v49  ;;  %v2109_v29 = vcombine.high %v1485_v48, %v1492_v49  ;;  %v1529_v33 = vcombine.low %v1501_v51, %v1508_v52  ;;  %v2110_v57 = vcombine.high %v1501_v51, %v1508_v52  ;;  %v2117_v48 = vld [vmem:[%s2951_s7] ss:$0 sm:$0xff] }
 0x663   : > { %v2118_v51 = vld [vmem:[%s2952_s8] ss:$0 sm:$0xff] }
 0x664   : > { %v1520_v59 = vrot.slane %v1513_v53, %v2626_v43  ;;  %v1528_v60 = vrot.slane %v2109_v29, %v2626_v43  ;;  %v1536_v61 = vrot.slane %v1529_v33, %v2626_v43  ;;  %v1544_v62 = vrot.slane %v2110_v57, %v2626_v43  ;;  %v2335_v33 = vld [vmem:[%s2955_s11 + $0x50] sm:$0xff]  }
 0x665   : > { %v2336_v57 = vld [vmem:[%s2955_s11 + $0x10] sm:$0xff]  }
 0x666   : > { %v1546_v1 = vcombine.high %v1520_v59, %v1528_v60  ;;  %v1562_v3 = vcombine.high %v1536_v61, %v1544_v62  ;;  %v1545_v55 = vcombine.low %v1520_v59, %v1528_v60  ;;  %v1561_v4 = vcombine.low %v1536_v61, %v1544_v62  ;;  %v2338_v59 = vld [vmem:[%s2955_s11 + $0x18] sm:$0xff]   ;;  %v2339_v60 = vld [vmem:[%s2955_s11 + $0x60] sm:$0xff]   ;;  %v2341_v62 = vld [vmem:[%s2955_s11 + $0x68] sm:$0xff]  }
 0x667   : > { %v2340_v61 = vld [vmem:[%s2955_s11 + $0x20] sm:$0xff]  }
 0x668   : > { %v1560_v54 = vrot.slane %v1546_v1, %v2629_v50  ;;  %v1576_v56 = vrot.slane %v1562_v3, %v2629_v50  ;;  %v1553_v5 = vrot.slane %v1545_v55, %v2629_v50  ;;  %v1569_v6 = vrot.slane %v1561_v4, %v2629_v50  ;;  %v2342_v1 = vld [vmem:[%s2955_s11 + $0x28] sm:$0xff]   ;;  %v2343_v3 = vld [vmem:[%s2955_s11 + $0x70] sm:$0xff]   ;;  %v2345_v4 = vld [vmem:[%s2955_s11 + $0x78] sm:$0xff]  }
 0x669   : > { %v2344_v55 = vld [vmem:[%s2955_s11 + $0x30] sm:$0xff]  }
 0x66a   : > { %v1579_v7 = vcombine.low %v1560_v54, %v1576_v56  ;;  %v1578_v8 = vcombine.high %v1553_v5, %v1569_v6  ;;  %v1580_v9 = vcombine.high %v1560_v54, %v1576_v56  ;;  %v1577_v10 = vcombine.low %v1553_v5, %v1569_v6  ;;  %v2346_v54 = vld [vmem:[%s2955_s11 + $0x38] sm:$0xff]   ;;  %v1720_v56 = vld [vmem:[%s2954_s10] sm:$0x3] }
 0x66b   : > { %v1725_v5 = vrot.slane %v1720_v56, %v482_v28  ;;  %v1729_v6 = vrot.slane %v1720_v56, %v486_v38 }
 0x66c   : > { %1586 = vrot.lane.b32.xlu1 %v1579_v7, %s2444_s16  ;;  %1582 = vrot.lane.b32.xlu0 %v1578_v8, %s2445_s20  ;;  %s429_s20 = sand.u32 1, %s2425_s26   ;;  %s2901_s16 = scalar_lea.hbm %s2957_s13, %s2146_s0 }
 0x66d   : > { %s2006_s22 = scalar_lea.sflag [#allocation3], %s429_s20 }
 0x670   : > { %1590 = vrot.lane.b32.xlu1 %v1580_v9, %s2446_s21  ;;  %s2082_s21 = sshll.u32 %s429_s20, 3 }
 0x671   : > { %s431_s1 = scalar_lea.vmem [#allocation2], %s2082_s21  ;;  %s2375_s21 = sshll.u32 %s2447_s29, 4  ;;  %s2376_s21 = int_to_ptr.vmem [resolvable:$false] %s2375_s21 }
 0x672   : > { %s2019_s24 = sshll.u32 %s431_s1, 4  ;;  %s2377_s2 = scalar_lea.vmem %s2376_s21, 256  ;;  %s2903_s24 = int_to_ptr.vmem [resolvable:$true] %s2019_s24 }
 0x673   : > { %s2371_s23 = scalar_lea.vmem %s2903_s24, 128  ;;  %p2378_p0 = scmp.lt.s32.totalorder %s2903_s24, %s2376_s21 }
 0x674   : > { %p2372_p11 = scmp.ne.s32.totalorder %s2903_s24, %s2371_s23  ;;  %p2379_p1 = scmp.lt.s32.totalorder %s2377_s2, %s2371_s23 }
 0x676   : > { %p2373_p12 = pnand %p2372_p11, %p2556_p5  ;;  %p2380_p2 = por %p2379_p1, %p2378_p0 }
 0x678   : > { %p2374_p13 = pneg %p2373_p12 }
 0x67a   : > { %p2381_p3 = pnand %p2380_p2, %p2374_p13 }
 0x6de   : > { %v1587_v43 = vpop.permute.xlu1 %1586  ;;  %v1583_v12 = vpop.permute.xlu0 %1582 }
 0x6df   : > { %v1593_v13 = vsel %vm1026_vm2, %v1577_v10, %v1583_v12 }
 0x6e0   : > { %v1595_v63 = vsel %vm1594_vm5, %v1593_v13, %v1587_v43 }
 0x6e2   : > { %v1591_v14 = vpop.permute.xlu1 %1590 }
 0x6e3   : > { %v1597_v2 = vsel %vm1596_vm6, %v1595_v63, %v1591_v14 }
 0x6e4   : > { %v1598_v50 = vpack.c.bf16 %v1597_v2, %v1597_v2 }
 0x6e6   : > { %2249 = vmatmul.mubr.msk.bf16.vlgmr.msra.gmra.mrb[12].mxu0 %vm440_vm0, %v1598_v50 }
 0x6e7   : > { %2171 = vmatpush3.bf16.msra.mxu0 %v2332_v40 }
 0x6e8   : > { %2172 = vmatprep.subr.bf16.mxu0 %v2333_v41 }
 0x6eb   : > { %2173 = vmatpush3.bf16.msra.mxu0 %v2334_v42 }
 0x6ec   : > { %2174 = vmatprep.subr.bf16.mxu0 %v2335_v33 }
 0x6ef   : > { %2175 = vmatpush3.bf16.msra.mxu0 %v2336_v57 }
 0x6f0   : > { %2176 = vmatprep.subr.bf16.mxu0 %v2337_v58 }
 0x6f3   : > { %2177 = vmatpush3.bf16.msra.mxu0 %v2338_v59 }
 0x6f4   : > { %2178 = vmatprep.subr.bf16.mxu0 %v2339_v60 }
 0x6f7   : > { %2179 = vmatpush3.bf16.msra.mxu0 %v2340_v61 }
 0x6f8   : > { %2180 = vmatprep.subr.bf16.mxu0 %v2341_v62 }
 0x6fb   : > { %2181 = vmatpush3.bf16.msra.mxu0 %v2342_v1 }
 0x6fc   : > { %2182 = vmatprep.subr.bf16.mxu0 %v2343_v3 }
 0x6ff   : > { %2183 = vmatpush3.bf16.msra.mxu0 %v2344_v55 }
 0x700   : > { %2184 = vmatprep.subr.bf16.mxu0 %v2345_v4 }
 0x703   : > { %2185 = vmatpush3.bf16.msra.mxu0 %v2346_v54 }
 0x7b9   : > { %v1675_v16 = vpop.f32.mrb[12].mxu0 }
 0x7ba   : > { %v1676_v17 = vadd.f32 %v2111_v15, %v1675_v16  ;;  %v2250_v18 = vpop.f32.mrb[13].mxu0 }
 0x7bb   : > { %v1678_v11 = vpop.f32.mrb[14].mxu0 }
 0x7bc   : > { %v2800_v19 = vadd.f32 %v1676_v17, %v2571_v0  ;;  %v2251_v20 = vpop.f32.mrb[15].mxu0  ;;  %v2319_v0 = vld [vmem:[%s2953_s9] ss:$8 sps:$4 sm:$0xff]  }
 0x7bd   : > { %1776 = vmatpush1.bf16.msra.mxu1 %v2319_v0  ;;  %v2128_v20 = vld [vmem:[%s2956_s12] ss:$0 sm:$0xff] }
 0x7be   : > { %v1684_v22 = vsel %vm440_vm0, %v2800_v19, 0.0  ;;  %1777 = vmatprep.subr.bf16.mxu1 %v2324_v32 }
 0x7bf   : > { %1685 = vadd.xlane.f32.xlu0 %v1684_v22 }
 0x7c1   : > { %1778 = vmatpush1.bf16.msra.mxu1 %v2322_v21 }
 0x7c2   : > { %1779 = vmatprep.subr.bf16.mxu1 %v2327_v34 }
 0x7c5   : > { %1780 = vmatpush1.bf16.msra.mxu1 %v2325_v35 }
 0x7c6   : > { %1781 = vmatprep.subr.bf16.mxu1 %v2330_v37 }
 0x7c9   : > { %1782 = vmatpush1.bf16.msra.mxu1 %v2328_v36 }
 0x84c   : > { %v1686_v23 = vpop.xlane.xlu0 %1685 }
 0x84d   : > { %v1687_v24 = vmul.f32 0.015625, %v1686_v23 }
 0x84f   : > { %v1688_v25 = vsub.f32 %v2800_v19, %v1687_v24 }
 0x851   : > { %v1689_v26 = vmul.f32 %v1688_v25, %v1688_v25 }
 0x853   : > { %v1690_v30 = vsel %vm440_vm0, %v1689_v26, 0.0 }
 0x854   : > { %1691 = vadd.xlane.f32.xlu1 %v1690_v30 }
 0x8e1   : > { %v1692_v44 = vpop.xlane.xlu1 %1691 }
 0x8e2   : > { %v1693_v45 = vmul.f32 0.015625, %v1692_v44 }
 0x8e4   : > { %v1694_v46 = vadd.f32 1e-06, %v1693_v45 }
 0x8e6   : > { %2365 = vrsqrt.f32 %v1694_v46 }
 0x8f0   : > { %v2366_v47 = vpop.eup %2365 }
 0x8f1   : > { %v1696_v49 = vmul.f32 %v2366_v47, %v1688_v25 }
 0x8f3   : > { %v1703_v52 = vmul.f32 %v2117_v48, %v1696_v49 }
 0x8f5   : > { %v1710_v53 = vadd.f32 %v2118_v51, %v1703_v52 }
 0x8f7   : > { %v1711_v29 = vpack.c.bf16 %v1710_v53, %v1710_v53 }
 0x8f9   : > { %2127 = vmatmul.mubr.msk.bf16.vlgmr.msra.gmra.mrb[24].mxu1 %vm440_vm0, %v1711_v29 }
 0x9cc   : > { %v1809_v7 = vpop.f32.mrb[24].mxu1 }
 0x9cd   : > { %v1810_v8 = vadd.f32 %v1809_v7, %v1725_v5  ;;  %v1811_v9 = vpop.f32.mrb[25].mxu1 }
 0x9ce   : > { %v1812_v10 = vadd.f32 %v1811_v9, %v1729_v6  ;;  %v1813_v43 = vpop.f32.mrb[26].mxu1 }
 0x9cf   : > { %v1818_v12 = vmul.f32 0.70710677, %v1810_v8  ;;  %v1814_v13 = vpop.f32.mrb[27].mxu1  ;;  %v1816_v50 = vmul.f32 0.5, %v1810_v8 }
 0x9d0   : > { %v1819_v14 = vmul.f32 0.70710677, %v1812_v10  ;;  %v1817_v16 = vmul.f32 0.5, %v1812_v10 }
 0x9d1   : > { %2367 = verf.f32 %v1818_v12 }
 0x9d2   : > { %2369 = verf.f32 %v1819_v14 }
 0x9db   : > { %v2368_v63 = vpop.eup %2367 }
 0x9dc   : > { %v2370_v2 = vpop.eup %2369  ;;  %v1822_v15 = vadd.f32 1.0, %v2368_v63 }
 0x9dd   : > { %v1823_v28 = vadd.f32 1.0, %v2370_v2 }
 0x9de   : > { %v1824_v27 = vmul.f32 %v1822_v15, %v1816_v50 }
 0x9df   : > { %v1825_v38 = vmul.f32 %v1823_v28, %v1817_v16 }
 0x9e0   : > { %v1826_v18 = vpack.c.bf16 %v1824_v27, %v1824_v27 }
 0x9e1   : > { %v1827_v17 = vpack.c.bf16 %v1825_v38, %v1825_v38 }
 0x9e3   : > { %1995 = vmatprep.mubr.bf16.mxu0 %v1827_v17 }
 0x9e4   : > { %1996 = vmatmul.mubr.bf16.vlgmr.msra.gmra.mrb[16].mxu0 %v1826_v18 }
 0xab7   : > { %v2186_v11 = vpop.f32.mrb[16].mxu0 }
 0xab8   : > { %v2187_v22 = vpop.f32.mrb[17].mxu0 }
 0xab9   : > { %v2188_v23 = vadd.f32 %v2187_v22, %v2186_v11  ;;  %v2189_v24 = vpop.f32.mrb[18].mxu0 }
 0xaba   : > { %v2190_v25 = vpop.f32.mrb[19].mxu0 }
 0xabb   : > { %v1998_v26 = vadd.f32 %v2188_v23, %v2128_v20 }
 0xabd   : > { %v2003_v30 = vadd.f32 %v1998_v26, %v2800_v19 }
 0xabf   : > { %2004 = vst.msk [vmem:[%s431_s1] sm:$0xff] %vm440_vm0, %v2003_v30 }
 0xac0   : > { %2384 = shalt.err (!%p2381_p3)
}
 0xac1   : > { %s2385_s20 = scalar_lea.hbm %s2901_s16, 128  ;;  %s2389_s30 = scalar_lea.hbm %s2957_s13, 256 }
 0xac2   : > { %p2386_p4 = scmp.ne.s32.totalorder %s2901_s16, %s2385_s20  ;;  %p2390_p9 = scmp.lt.u32.totalorder %s2901_s16, %s2957_s13 }
 0xac3   : > { %p2391_p10 = scmp.lt.u32.totalorder %s2389_s30, %s2385_s20  ;;  %p2393_p12 = scmp.lt.u32.totalorder %s2385_s20, %s2901_s16 }
 0xac4   : > { %p2387_p7 = pnand %p2386_p4, %p2556_p5 }
 0xac5   : > { %p2392_p11 = por %p2391_p10, %p2390_p9 }
 0xac6   : > { %p2388_p8 = pneg %p2387_p7 }
 0xac7   : > { %p2394_p13 = por %p2393_p12, %p2392_p11 }
 0xac9   : > { %p2395_p0 = pnand %p2394_p13, %p2388_p8 }
 0xacb   : > { %2398 = shalt.err (!%p2395_p0)
}
 0xacc   : > { %2252 = dma.vmem_to_hbm [thread:$0]  (%p2556_p5), %s2903_s24, 128, %s2901_s16, %s2006_s22  }
 0xacd PF: > { %p2258_p1 = scmp.ge.s32.totalorder %s2433_s28, 2  ;;  %s2031_s2 = sand.u32 1, %s2421_s25  }
 0xace   : > { %s2032_s23 = scalar_lea.sflag [#allocation3], %s2031_s2 }
 0xacf   : > { %p2255_p2 = pnand %p2258_p1, %p2560_p6 }
 0xad1   : > { %2416 = dma.done.wait (!%p2255_p2), %s2032_s23, 128  }
 0xad2   : > { %2418 = vsyncadd (!%p2255_p2), %s2032_s23, 4294967168  ;;  %p23_p3 = scmp.ge.s32.totalorder %s2543_s14, 4   ;;  %s2966_s25 = smov %s2425_s26 }
 0xad3   : > { %s2967_s26 = smov %s2429_s27  ;;  %s2968_s27 = smov %s2554_s17 }
 0xad4   : > { %s2969_s28 = smov %s2543_s14  ;;  %25 = sbr.rel (!%p23_p3) target bundleno = 7 (0x7), region = 107 }
 0xadb   :  { %2037 = vsyncpa [#allocation3], 1 }
 0xadc   :  { %2039 = vsyncpa [#allocation3 + $0x1], 1 }

</bundles_post_ra>
